<compile_context>
chip_gen: v5e
topology: v5e:2x2
jax: 0.10.0
libtpu: 0.0.40
codegen_flags: <defaults>
</compile_context>

<pallas_src>
import functools

import numpy as np
import jax
import jax.numpy as jnp
from jax.experimental import pallas as pl
from jax.experimental.pallas import tpu as pltpu


def _tap_shifts_and_masks(H, W):
    """Static flat-index shifts and validity masks for the 9 taps of a 3x3, pad=1 conv."""
    HW = H * W
    shifts = []
    masks = np.zeros((9, HW), dtype=np.float32)
    r = np.arange(H)[:, None]
    c = np.arange(W)[None, :]
    for dy in range(3):
        for dx in range(3):
            oy, ox = dy - 1, dx - 1
            t = dy * 3 + dx
            shifts.append(oy * W + ox)
            valid = (r + oy >= 0) & (r + oy < H) & (c + ox >= 0) & (c + ox < W)
            masks[t] = valid.reshape(HW).astype(np.float32)
    return tuple(shifts), jnp.asarray(masks)


def _basic_block_kernel(masks_ref, x_ref, w1_ref, b1_ref, w2_ref, b2_ref,
                        out_ref, im_ref, *, Cp, Nblk, shifts):
    """One lane-chunk of Bb whole images per grid step.

    masks_ref : (9, Nblk)     cdt  per-image tap validity masks, tiled across the Bb images
    x_ref     : (Cp, Nblk)    f32  input chunk, channels zero-padded to Cp
    w1_ref    : (Cp, 9*Cp)    cdt  conv1 weights (im2col layout), BN1 scale pre-folded
    b1_ref    : (Cp, 1)       f32  folded BN1 bias
    w2_ref    : (Cp, 9*Cp)    cdt  conv2 weights, BN2 scale pre-folded
    b2_ref    : (Cp, 1)       f32  folded BN2 bias
    out_ref   : (C, Nblk)     out dtype (only the real channel rows are written back)
    im_ref    : (9*Cp, Nblk)  cdt  VMEM scratch holding the staged im2col matrix
    """
    x = x_ref[...]                 # (Cp, Nblk) f32 (kept f32 for the residual path)
    masks = masks_ref[...]         # (9, Nblk)  compute dtype (0.0 / 1.0 values, exact)
    cdt = w1_ref.dtype             # MXU input dtype (bf16 by default, f32 in exact mode)

    def im2col(a_f32):
        # Stage the (9*Cp, Nblk) im2col matrix in scratch: each tap is a cyclic lane-roll of
        # the flattened chunk (XLU slot), cast once to the MXU dtype and masked so that both
        # out-of-image halo positions and cross-image leakage are zeroed.  Staging in scratch
        # (instead of a concatenate) keeps the f32 live range to one (Cp, Nblk) slab.
        for t, s in enumerate(shifts):
            if s == 0:
                piece = a_f32.astype(cdt)                        # center tap: mask all-ones
            else:
                shifted = pltpu.roll(a_f32, shift=(-s) % Nblk, axis=1)
                piece = shifted.astype(cdt) * masks[t:t + 1, :]
            im_ref[t * Cp:(t + 1) * Cp, :] = piece

    # conv1 as a single MXU matmul (BN1 scale folded into w1), bias, ReLU.
    im2col(x)
    o1 = jnp.dot(w1_ref[...], im_ref[...], preferred_element_type=jnp.float32)
    mid = jnp.maximum(o1 + b1_ref[...], 0.0)                     # (Cp, Nblk) f32

    # conv2 as a single MXU matmul (BN2 scale folded into w2), bias, residual add, ReLU.
    im2col(mid)
    o2 = jnp.dot(w2_ref[...], im_ref[...], preferred_element_type=jnp.float32)
    res = jnp.maximum(o2 + b2_ref[...] + x, 0.0)                 # (Cp, Nblk) f32
    out_ref[...] = res[:out_ref.shape[0], :].astype(out_ref.dtype)


def _fold_conv_weight(w_oihw, bn_scale, Cp, compute_dtype):
    """(Cout, Cin, 3, 3) OIHW -> (Cp, 9*Cp) with Wm[co, t*Cp + ci] = s[co] * w[co, ci, dy, dx]."""
    Cout, Cin = w_oihw.shape[0], w_oihw.shape[1]
    w = jnp.transpose(w_oihw, (0, 2, 3, 1)).reshape(Cout, 9, Cin)   # [co, t, ci]
    w = w * jnp.asarray(bn_scale, jnp.float32).reshape(Cout, 1, 1)  # fold BN scale (host-side)
    w = jnp.pad(w, ((0, Cp - Cout), (0, 0), (0, Cp - Cin)))
    return w.reshape(Cp, 9 * Cp).astype(compute_dtype)


def _fold_bn_bias(b, Cp):
    b = jnp.asarray(b, jnp.float32).reshape(-1)
    return jnp.pad(b, (0, Cp - b.shape[0])).reshape(Cp, 1)


def basic_block_pallas(x_nchw, w1_oihw, s1, b1, w2_oihw, s2, b2, *,
                       compute_dtype=jnp.bfloat16, out_dtype=None, target_lanes=2048):
    """BasicBlock forward.  x_nchw: (B, C, H, W) (PyTorch layout).  Returns (B, C, H, W).

    compute_dtype: MXU input dtype (bf16 recommended; accumulation is always f32).
    out_dtype:     output dtype (defaults to x's dtype; pass bf16 to halve writeback).
    target_lanes:  target matmul N width per grid step (images are folded into lanes).
    """
    B, C, H, W = x_nchw.shape
    Cout = w1_oihw.shape[0]
    if C != Cout or w2_oihw.shape[:2] != (Cout, Cout):
        raise ValueError("BasicBlock (stride=1, no downsample) requires inplanes == planes")

    HW = H * W
    out_dtype = x_nchw.dtype if out_dtype is None else out_dtype

    # Pad channels to a full sublane tile of the MXU input dtype (8 rows f32 / 16 rows bf16) so
    # each im2col tap piece is an aligned sublane-tile pack.  (v5e note: with bf16 this can push
    # K = 9*Cp past its 128-deep MXU at tiny C; correct either way.)
    ctile = 8 if np.dtype(compute_dtype).itemsize == 4 else 16
    Cp = ((C + ctile - 1) // ctile) * ctile

    # Fold the batch into the matmul N (lane) dimension: each grid step processes Bb whole
    # images as one wide lane-dense chunk.  Cross-image roll leakage is masked, so exact.
    Bb = max(1, min(B, target_lanes // max(HW, 1)))
    if (Bb * HW) % 128 != 0:
        Bb = B                       # single full-extent lane block (no 128-divisibility need)
    # TODO(synk): on v7x keep >=2 grid steps (2 TensorCores) once per-step work is compute-bound.
    Bp = ((B + Bb - 1) // Bb) * Bb   # pad batch with zero images (outputs are sliced away)
    Nblk = Bb * HW
    Ntot = Bp * HW
    grid = (Ntot // Nblk,)

    # (B, C, H, W) -> (Cp, Bp*HW): one-time XLA transpose + zero pad.
    x32 = x_nchw.astype(jnp.float32).reshape(B, C, HW).transpose(1, 0, 2)      # (C, B, HW)
    x32 = jnp.pad(x32, ((0, Cp - C), (0, Bp - B), (0, 0))).reshape(Cp, Ntot)

    w1m = _fold_conv_weight(w1_oihw, s1, Cp, compute_dtype)
    w2m = _fold_conv_weight(w2_oihw, s2, Cp, compute_dtype)
    b1p = _fold_bn_bias(b1, Cp)
    b2p = _fold_bn_bias(b2, Cp)

    shifts, masks_hw = _tap_shifts_and_masks(H, W)
    masks = jnp.tile(masks_hw, (1, Bb)).astype(compute_dtype)    # (9, Nblk), grid-invariant

    kernel = functools.partial(_basic_block_kernel, Cp=Cp, Nblk=Nblk, shifts=shifts)

    out = pl.pallas_call(
        kernel,
        out_shape=jax.ShapeDtypeStruct((C, Ntot), out_dtype),
        grid_spec=pltpu.PrefetchScalarGridSpec(
            num_scalar_prefetch=0,
            grid=grid,
            in_specs=[
                pl.BlockSpec((9, Nblk), lambda g: (0, 0)),        # masks  (grid-invariant)
                pl.BlockSpec((Cp, Nblk), lambda g: (0, g)),       # x lane-chunk
                pl.BlockSpec((Cp, 9 * Cp), lambda g: (0, 0)),     # w1     (grid-invariant)
                pl.BlockSpec((Cp, 1), lambda g: (0, 0)),          # b1     (grid-invariant)
                pl.BlockSpec((Cp, 9 * Cp), lambda g: (0, 0)),     # w2     (grid-invariant)
                pl.BlockSpec((Cp, 1), lambda g: (0, 0)),          # b2     (grid-invariant)
            ],
            out_specs=pl.BlockSpec((C, Nblk), lambda g: (0, g)),  # only real channel rows
            scratch_shapes=[pltpu.VMEM((9 * Cp, Nblk), compute_dtype)],
        ),
        compiler_params=pltpu.CompilerParams(
            dimension_semantics=("parallel",),
            vmem_limit_bytes=32 * 1024 * 1024,
        ),
    )(masks, x32, w1m, b1p, w2m, b2p)

    # (C, Bp*HW) -> (B, C, H, W): drop padded batch images, one-time XLA transpose back.
    out = out.reshape(C, Bp, HW)[:, :B, :]
    return out.transpose(1, 0, 2).reshape(B, C, H, W)


# --------------------------- pure-JAX reference ---------------------------
def basic_block_ref(x_nchw, w1, s1, b1, w2, s2, b2):
    def conv(x, w):
        return jax.lax.conv_general_dilated(
            x, w, window_strides=(1, 1), padding=((1, 1), (1, 1)),
            dimension_numbers=("NCHW", "OIHW", "NCHW"))
    out = conv(x_nchw, w1) * s1.reshape(1, -1, 1, 1) + b1.reshape(1, -1, 1, 1)
    out = jnp.maximum(out, 0.0)
    out = conv(out, w2) * s2.reshape(1, -1, 1, 1) + b2.reshape(1, -1, 1, 1)
    return jnp.maximum(out + x_nchw, 0.0)


if __name__ == "__main__":
    # Small shapes consistent with the module: B=2, inplanes=planes=4, 16x16 spatial.
    B, C, H, W = 2, 4, 16, 16
    inplanes = planes = C

    key = jax.random.PRNGKey(0)
    k = iter(jax.random.split(key, 12))

    # Input and weights in PyTorch layouts (NCHW / OIHW) — consumed directly.
    x = jax.random.normal(next(k), (B, C, H, W), dtype=jnp.float32)
    w1 = jax.random.normal(next(k), (planes, inplanes, 3, 3), jnp.float32) * 0.1
    w2 = jax.random.normal(next(k), (planes, inplanes, 3, 3), jnp.float32) * 0.1

    # BatchNorm (eval mode) params, folded to scale/bias: y = x*scale + bias.
    eps = 1e-5
    gamma1 = 1.0 + 0.1 * jax.random.normal(next(k), (planes,), jnp.float32)
    beta1 = 0.1 * jax.random.normal(next(k), (planes,), jnp.float32)
    mean1 = 0.1 * jax.random.normal(next(k), (planes,), jnp.float32)
    var1 = jnp.abs(jax.random.normal(next(k), (planes,), jnp.float32)) + 0.5
    gamma2 = 1.0 + 0.1 * jax.random.normal(next(k), (planes,), jnp.float32)
    beta2 = 0.1 * jax.random.normal(next(k), (planes,), jnp.float32)
    mean2 = 0.1 * jax.random.normal(next(k), (planes,), jnp.float32)
    var2 = jnp.abs(jax.random.normal(next(k), (planes,), jnp.float32)) + 0.5

    s1 = gamma1 / jnp.sqrt(var1 + eps)
    b1 = beta1 - mean1 * s1
    s2 = gamma2 / jnp.sqrt(var2 + eps)
    b2 = beta2 - mean2 * s2

    ref = basic_block_ref(x, w1, s1, b1, w2, s2, b2)

    # Exact mode (f32 MXU inputs): must match the XLA conv reference tightly.
    out_f32 = jax.block_until_ready(
        basic_block_pallas(x, w1, s1, b1, w2, s2, b2, compute_dtype=jnp.float32))
    assert out_f32.shape == (B, C, H, W), out_f32.shape
    assert jnp.allclose(out_f32, ref, atol=1e-4, rtol=1e-4), "f32 kernel mismatch vs reference"

    # Performance mode (bf16 MXU inputs, f32 accumulation): looser tolerance.
    out_bf16 = jax.block_until_ready(
        basic_block_pallas(x, w1, s1, b1, w2, s2, b2, compute_dtype=jnp.bfloat16))
    assert out_bf16.shape == (B, C, H, W), out_bf16.shape
    assert jnp.allclose(out_bf16, ref, atol=5e-2, rtol=5e-2), "bf16 kernel mismatch vs reference"

    print("KERNEL_OK")
</pallas_src>

<mosaic_0001>
module attributes {stable_mosaic.version = 11 : i64} {
  func.func @_basic_block_kernel(%arg0: i32, %arg1: memref<9x512xf32, #tpu.memory_space<vmem>>, %arg2: memref<8x512xf32, #tpu.memory_space<vmem>>, %arg3: memref<8x72xf32, #tpu.memory_space<vmem>>, %arg4: memref<8x1xf32, #tpu.memory_space<vmem>>, %arg5: memref<8x72xf32, #tpu.memory_space<vmem>>, %arg6: memref<8x1xf32, #tpu.memory_space<vmem>>, %arg7: memref<4x512xf32, #tpu.memory_space<vmem>>, %arg8: memref<72x512xf32, #tpu.memory_space<vmem>>) attributes {dimension_semantics = [#tpu.dimension_semantics<parallel>], iteration_bounds = array<i64: 1>, scalar_prefetch = 0 : i64, scratch_operands = 1 : i64, tpu.core_type = #tpu.core_type<tc>, window_params = [{pipeline_mode = #tpu.pipeline_mode<synchronous>, transform_indices = @transform_0, window_bounds = array<i64: 9, 512>}, {transform_indices = @transform_1, window_bounds = array<i64: 8, 512>}, {pipeline_mode = #tpu.pipeline_mode<synchronous>, transform_indices = @transform_2, window_bounds = array<i64: 8, 72>}, {pipeline_mode = #tpu.pipeline_mode<synchronous>, transform_indices = @transform_3, window_bounds = array<i64: 8, 1>}, {pipeline_mode = #tpu.pipeline_mode<synchronous>, transform_indices = @transform_4, window_bounds = array<i64: 8, 72>}, {pipeline_mode = #tpu.pipeline_mode<synchronous>, transform_indices = @transform_5, window_bounds = array<i64: 8, 1>}, {transform_indices = @transform_6, window_bounds = array<i64: 4, 512>}]} {
    %c0 = arith.constant 0 : index
    %c0_0 = arith.constant 0 : index
    %0 = vector.load %arg2[%c0, %c0_0] : memref<8x512xf32, #tpu.memory_space<vmem>>, vector<8x512xf32>
    %c0_1 = arith.constant 0 : index
    %c0_2 = arith.constant 0 : index
    %1 = vector.load %arg1[%c0_1, %c0_2] : memref<9x512xf32, #tpu.memory_space<vmem>>, vector<9x512xf32>
    %c17_i32 = arith.constant 17 : i32
    %2 = tpu.dynamic_rotate %0 by %c17_i32 dim 1 : vector<8x512xf32>, i32 -> vector<8x512xf32>
    %3 = vector.extract_strided_slice %1 {offsets = [0, 0], sizes = [1, 512], strides = [1, 1]} : vector<9x512xf32> to vector<1x512xf32>
    %4 = vector.broadcast %3 : vector<1x512xf32> to vector<8x512xf32>
    %5 = arith.mulf %2, %4 : vector<8x512xf32>
    %c0_3 = arith.constant 0 : index
    %c0_4 = arith.constant 0 : index
    %6 = vector.load %arg8[%c0_3, %c0_4] : memref<72x512xf32, #tpu.memory_space<vmem>>, vector<8x512xf32>
    tpu.vector_store %arg8[%c0_3, %c0_4], %5 {strides = array<i32>} : memref<72x512xf32, #tpu.memory_space<vmem>>, vector<8x512xf32>,
    %c16_i32 = arith.constant 16 : i32
    %7 = tpu.dynamic_rotate %0 by %c16_i32 dim 1 : vector<8x512xf32>, i32 -> vector<8x512xf32>
    %8 = vector.extract_strided_slice %1 {offsets = [1, 0], sizes = [1, 512], strides = [1, 1]} : vector<9x512xf32> to vector<1x512xf32>
    %9 = vector.broadcast %8 : vector<1x512xf32> to vector<8x512xf32>
    %10 = arith.mulf %7, %9 : vector<8x512xf32>
    %c8 = arith.constant 8 : index
    %c0_5 = arith.constant 0 : index
    %11 = vector.load %arg8[%c8, %c0_5] : memref<72x512xf32, #tpu.memory_space<vmem>>, vector<8x512xf32>
    tpu.vector_store %arg8[%c8, %c0_5], %10 {strides = array<i32>} : memref<72x512xf32, #tpu.memory_space<vmem>>, vector<8x512xf32>,
    %c15_i32 = arith.constant 15 : i32
    %12 = tpu.dynamic_rotate %0 by %c15_i32 dim 1 : vector<8x512xf32>, i32 -> vector<8x512xf32>
    %13 = vector.extract_strided_slice %1 {offsets = [2, 0], sizes = [1, 512], strides = [1, 1]} : vector<9x512xf32> to vector<1x512xf32>
    %14 = vector.broadcast %13 : vector<1x512xf32> to vector<8x512xf32>
    %15 = arith.mulf %12, %14 : vector<8x512xf32>
    %c16 = arith.constant 16 : index
    %c0_6 = arith.constant 0 : index
    %16 = vector.load %arg8[%c16, %c0_6] : memref<72x512xf32, #tpu.memory_space<vmem>>, vector<8x512xf32>
    tpu.vector_store %arg8[%c16, %c0_6], %15 {strides = array<i32>} : memref<72x512xf32, #tpu.memory_space<vmem>>, vector<8x512xf32>,
    %c1_i32 = arith.constant 1 : i32
    %17 = tpu.dynamic_rotate %0 by %c1_i32 dim 1 : vector<8x512xf32>, i32 -> vector<8x512xf32>
    %18 = vector.extract_strided_slice %1 {offsets = [3, 0], sizes = [1, 512], strides = [1, 1]} : vector<9x512xf32> to vector<1x512xf32>
    %19 = vector.broadcast %18 : vector<1x512xf32> to vector<8x512xf32>
    %20 = arith.mulf %17, %19 : vector<8x512xf32>
    %c24 = arith.constant 24 : index
    %c0_7 = arith.constant 0 : index
    %21 = vector.load %arg8[%c24, %c0_7] : memref<72x512xf32, #tpu.memory_space<vmem>>, vector<8x512xf32>
    tpu.vector_store %arg8[%c24, %c0_7], %20 {strides = array<i32>} : memref<72x512xf32, #tpu.memory_space<vmem>>, vector<8x512xf32>,
    %c32 = arith.constant 32 : index
    %c0_8 = arith.constant 0 : index
    %22 = vector.load %arg8[%c32, %c0_8] : memref<72x512xf32, #tpu.memory_space<vmem>>, vector<8x512xf32>
    tpu.vector_store %arg8[%c32, %c0_8], %0 {strides = array<i32>} : memref<72x512xf32, #tpu.memory_space<vmem>>, vector<8x512xf32>,
    %c511_i32 = arith.constant 511 : i32
    %23 = tpu.dynamic_rotate %0 by %c511_i32 dim 1 : vector<8x512xf32>, i32 -> vector<8x512xf32>
    %24 = vector.extract_strided_slice %1 {offsets = [5, 0], sizes = [1, 512], strides = [1, 1]} : vector<9x512xf32> to vector<1x512xf32>
    %25 = vector.broadcast %24 : vector<1x512xf32> to vector<8x512xf32>
    %26 = arith.mulf %23, %25 : vector<8x512xf32>
    %c40 = arith.constant 40 : index
    %c0_9 = arith.constant 0 : index
    %27 = vector.load %arg8[%c40, %c0_9] : memref<72x512xf32, #tpu.memory_space<vmem>>, vector<8x512xf32>
    tpu.vector_store %arg8[%c40, %c0_9], %26 {strides = array<i32>} : memref<72x512xf32, #tpu.memory_space<vmem>>, vector<8x512xf32>,
    %c497_i32 = arith.constant 497 : i32
    %28 = tpu.dynamic_rotate %0 by %c497_i32 dim 1 : vector<8x512xf32>, i32 -> vector<8x512xf32>
    %29 = vector.extract_strided_slice %1 {offsets = [6, 0], sizes = [1, 512], strides = [1, 1]} : vector<9x512xf32> to vector<1x512xf32>
    %30 = vector.broadcast %29 : vector<1x512xf32> to vector<8x512xf32>
    %31 = arith.mulf %28, %30 : vector<8x512xf32>
    %c48 = arith.constant 48 : index
    %c0_10 = arith.constant 0 : index
    %32 = vector.load %arg8[%c48, %c0_10] : memref<72x512xf32, #tpu.memory_space<vmem>>, vector<8x512xf32>
    tpu.vector_store %arg8[%c48, %c0_10], %31 {strides = array<i32>} : memref<72x512xf32, #tpu.memory_space<vmem>>, vector<8x512xf32>,
    %c496_i32 = arith.constant 496 : i32
    %33 = tpu.dynamic_rotate %0 by %c496_i32 dim 1 : vector<8x512xf32>, i32 -> vector<8x512xf32>
    %34 = vector.extract_strided_slice %1 {offsets = [7, 0], sizes = [1, 512], strides = [1, 1]} : vector<9x512xf32> to vector<1x512xf32>
    %35 = vector.broadcast %34 : vector<1x512xf32> to vector<8x512xf32>
    %36 = arith.mulf %33, %35 : vector<8x512xf32>
    %c56 = arith.constant 56 : index
    %c0_11 = arith.constant 0 : index
    %37 = vector.load %arg8[%c56, %c0_11] : memref<72x512xf32, #tpu.memory_space<vmem>>, vector<8x512xf32>
    tpu.vector_store %arg8[%c56, %c0_11], %36 {strides = array<i32>} : memref<72x512xf32, #tpu.memory_space<vmem>>, vector<8x512xf32>,
    %c495_i32 = arith.constant 495 : i32
    %38 = tpu.dynamic_rotate %0 by %c495_i32 dim 1 : vector<8x512xf32>, i32 -> vector<8x512xf32>
    %39 = vector.extract_strided_slice %1 {offsets = [8, 0], sizes = [1, 512], strides = [1, 1]} : vector<9x512xf32> to vector<1x512xf32>
    %40 = vector.broadcast %39 : vector<1x512xf32> to vector<8x512xf32>
    %41 = arith.mulf %38, %40 : vector<8x512xf32>
    %c64 = arith.constant 64 : index
    %c0_12 = arith.constant 0 : index
    %42 = vector.load %arg8[%c64, %c0_12] : memref<72x512xf32, #tpu.memory_space<vmem>>, vector<8x512xf32>
    tpu.vector_store %arg8[%c64, %c0_12], %41 {strides = array<i32>} : memref<72x512xf32, #tpu.memory_space<vmem>>, vector<8x512xf32>,
    %c0_13 = arith.constant 0 : index
    %c0_14 = arith.constant 0 : index
    %43 = vector.load %arg3[%c0_13, %c0_14] : memref<8x72xf32, #tpu.memory_space<vmem>>, vector<8x72xf32>
    %c0_15 = arith.constant 0 : index
    %c0_16 = arith.constant 0 : index
    %44 = vector.load %arg8[%c0_15, %c0_16] : memref<72x512xf32, #tpu.memory_space<vmem>>, vector<72x512xf32>
    %cst = arith.constant dense<0.000000e+00> : vector<8x512xf32>
    %45 = tpu.matmul %43, %44, %cst {dimension_numbers = #tpu.dot_dimension_numbers<[1], [0], [0], [1], [0, 0, 1, 1], [], []>} : vector<8x72xf32>, vector<72x512xf32>, vector<8x512xf32> -> vector<8x512xf32>
    %c0_17 = arith.constant 0 : index
    %c0_18 = arith.constant 0 : index
    %46 = vector.load %arg4[%c0_17, %c0_18] : memref<8x1xf32, #tpu.memory_space<vmem>>, vector<8x1xf32>
    %47 = vector.broadcast %46 : vector<8x1xf32> to vector<8x512xf32>
    %48 = arith.addf %45, %47 : vector<8x512xf32>
    %cst_19 = arith.constant 0.000000e+00 : f32
    %49 = vector.broadcast %cst_19 : f32 to vector<8x512xf32>
    %50 = arith.maximumf %48, %49 : vector<8x512xf32>
    %c17_i32_20 = arith.constant 17 : i32
    %51 = tpu.dynamic_rotate %50 by %c17_i32_20 dim 1 : vector<8x512xf32>, i32 -> vector<8x512xf32>
    %52 = vector.extract_strided_slice %1 {offsets = [0, 0], sizes = [1, 512], strides = [1, 1]} : vector<9x512xf32> to vector<1x512xf32>
    %53 = vector.broadcast %52 : vector<1x512xf32> to vector<8x512xf32>
    %54 = arith.mulf %51, %53 : vector<8x512xf32>
    %c0_21 = arith.constant 0 : index
    %c0_22 = arith.constant 0 : index
    %55 = vector.load %arg8[%c0_21, %c0_22] : memref<72x512xf32, #tpu.memory_space<vmem>>, vector<8x512xf32>
    tpu.vector_store %arg8[%c0_21, %c0_22], %54 {strides = array<i32>} : memref<72x512xf32, #tpu.memory_space<vmem>>, vector<8x512xf32>,
    %c16_i32_23 = arith.constant 16 : i32
    %56 = tpu.dynamic_rotate %50 by %c16_i32_23 dim 1 : vector<8x512xf32>, i32 -> vector<8x512xf32>
    %57 = vector.extract_strided_slice %1 {offsets = [1, 0], sizes = [1, 512], strides = [1, 1]} : vector<9x512xf32> to vector<1x512xf32>
    %58 = vector.broadcast %57 : vector<1x512xf32> to vector<8x512xf32>
    %59 = arith.mulf %56, %58 : vector<8x512xf32>
    %c8_24 = arith.constant 8 : index
    %c0_25 = arith.constant 0 : index
    %60 = vector.load %arg8[%c8_24, %c0_25] : memref<72x512xf32, #tpu.memory_space<vmem>>, vector<8x512xf32>
    tpu.vector_store %arg8[%c8_24, %c0_25], %59 {strides = array<i32>} : memref<72x512xf32, #tpu.memory_space<vmem>>, vector<8x512xf32>,
    %c15_i32_26 = arith.constant 15 : i32
    %61 = tpu.dynamic_rotate %50 by %c15_i32_26 dim 1 : vector<8x512xf32>, i32 -> vector<8x512xf32>
    %62 = vector.extract_strided_slice %1 {offsets = [2, 0], sizes = [1, 512], strides = [1, 1]} : vector<9x512xf32> to vector<1x512xf32>
    %63 = vector.broadcast %62 : vector<1x512xf32> to vector<8x512xf32>
    %64 = arith.mulf %61, %63 : vector<8x512xf32>
    %c16_27 = arith.constant 16 : index
    %c0_28 = arith.constant 0 : index
    %65 = vector.load %arg8[%c16_27, %c0_28] : memref<72x512xf32, #tpu.memory_space<vmem>>, vector<8x512xf32>
    tpu.vector_store %arg8[%c16_27, %c0_28], %64 {strides = array<i32>} : memref<72x512xf32, #tpu.memory_space<vmem>>, vector<8x512xf32>,
    %c1_i32_29 = arith.constant 1 : i32
    %66 = tpu.dynamic_rotate %50 by %c1_i32_29 dim 1 : vector<8x512xf32>, i32 -> vector<8x512xf32>
    %67 = vector.extract_strided_slice %1 {offsets = [3, 0], sizes = [1, 512], strides = [1, 1]} : vector<9x512xf32> to vector<1x512xf32>
    %68 = vector.broadcast %67 : vector<1x512xf32> to vector<8x512xf32>
    %69 = arith.mulf %66, %68 : vector<8x512xf32>
    %c24_30 = arith.constant 24 : index
    %c0_31 = arith.constant 0 : index
    %70 = vector.load %arg8[%c24_30, %c0_31] : memref<72x512xf32, #tpu.memory_space<vmem>>, vector<8x512xf32>
    tpu.vector_store %arg8[%c24_30, %c0_31], %69 {strides = array<i32>} : memref<72x512xf32, #tpu.memory_space<vmem>>, vector<8x512xf32>,
    %c32_32 = arith.constant 32 : index
    %c0_33 = arith.constant 0 : index
    %71 = vector.load %arg8[%c32_32, %c0_33] : memref<72x512xf32, #tpu.memory_space<vmem>>, vector<8x512xf32>
    tpu.vector_store %arg8[%c32_32, %c0_33], %50 {strides = array<i32>} : memref<72x512xf32, #tpu.memory_space<vmem>>, vector<8x512xf32>,
    %c511_i32_34 = arith.constant 511 : i32
    %72 = tpu.dynamic_rotate %50 by %c511_i32_34 dim 1 : vector<8x512xf32>, i32 -> vector<8x512xf32>
    %73 = vector.extract_strided_slice %1 {offsets = [5, 0], sizes = [1, 512], strides = [1, 1]} : vector<9x512xf32> to vector<1x512xf32>
    %74 = vector.broadcast %73 : vector<1x512xf32> to vector<8x512xf32>
    %75 = arith.mulf %72, %74 : vector<8x512xf32>
    %c40_35 = arith.constant 40 : index
    %c0_36 = arith.constant 0 : index
    %76 = vector.load %arg8[%c40_35, %c0_36] : memref<72x512xf32, #tpu.memory_space<vmem>>, vector<8x512xf32>
    tpu.vector_store %arg8[%c40_35, %c0_36], %75 {strides = array<i32>} : memref<72x512xf32, #tpu.memory_space<vmem>>, vector<8x512xf32>,
    %c497_i32_37 = arith.constant 497 : i32
    %77 = tpu.dynamic_rotate %50 by %c497_i32_37 dim 1 : vector<8x512xf32>, i32 -> vector<8x512xf32>
    %78 = vector.extract_strided_slice %1 {offsets = [6, 0], sizes = [1, 512], strides = [1, 1]} : vector<9x512xf32> to vector<1x512xf32>
    %79 = vector.broadcast %78 : vector<1x512xf32> to vector<8x512xf32>
    %80 = arith.mulf %77, %79 : vector<8x512xf32>
    %c48_38 = arith.constant 48 : index
    %c0_39 = arith.constant 0 : index
    %81 = vector.load %arg8[%c48_38, %c0_39] : memref<72x512xf32, #tpu.memory_space<vmem>>, vector<8x512xf32>
    tpu.vector_store %arg8[%c48_38, %c0_39], %80 {strides = array<i32>} : memref<72x512xf32, #tpu.memory_space<vmem>>, vector<8x512xf32>,
    %c496_i32_40 = arith.constant 496 : i32
    %82 = tpu.dynamic_rotate %50 by %c496_i32_40 dim 1 : vector<8x512xf32>, i32 -> vector<8x512xf32>
    %83 = vector.extract_strided_slice %1 {offsets = [7, 0], sizes = [1, 512], strides = [1, 1]} : vector<9x512xf32> to vector<1x512xf32>
    %84 = vector.broadcast %83 : vector<1x512xf32> to vector<8x512xf32>
    %85 = arith.mulf %82, %84 : vector<8x512xf32>
    %c56_41 = arith.constant 56 : index
    %c0_42 = arith.constant 0 : index
    %86 = vector.load %arg8[%c56_41, %c0_42] : memref<72x512xf32, #tpu.memory_space<vmem>>, vector<8x512xf32>
    tpu.vector_store %arg8[%c56_41, %c0_42], %85 {strides = array<i32>} : memref<72x512xf32, #tpu.memory_space<vmem>>, vector<8x512xf32>,
    %c495_i32_43 = arith.constant 495 : i32
    %87 = tpu.dynamic_rotate %50 by %c495_i32_43 dim 1 : vector<8x512xf32>, i32 -> vector<8x512xf32>
    %88 = vector.extract_strided_slice %1 {offsets = [8, 0], sizes = [1, 512], strides = [1, 1]} : vector<9x512xf32> to vector<1x512xf32>
    %89 = vector.broadcast %88 : vector<1x512xf32> to vector<8x512xf32>
    %90 = arith.mulf %87, %89 : vector<8x512xf32>
    %c64_44 = arith.constant 64 : index
    %c0_45 = arith.constant 0 : index
    %91 = vector.load %arg8[%c64_44, %c0_45] : memref<72x512xf32, #tpu.memory_space<vmem>>, vector<8x512xf32>
    tpu.vector_store %arg8[%c64_44, %c0_45], %90 {strides = array<i32>} : memref<72x512xf32, #tpu.memory_space<vmem>>, vector<8x512xf32>,
    %c0_46 = arith.constant 0 : index
    %c0_47 = arith.constant 0 : index
    %92 = vector.load %arg5[%c0_46, %c0_47] : memref<8x72xf32, #tpu.memory_space<vmem>>, vector<8x72xf32>
    %c0_48 = arith.constant 0 : index
    %c0_49 = arith.constant 0 : index
    %93 = vector.load %arg8[%c0_48, %c0_49] : memref<72x512xf32, #tpu.memory_space<vmem>>, vector<72x512xf32>
    %cst_50 = arith.constant dense<0.000000e+00> : vector<8x512xf32>
    %94 = tpu.matmul %92, %93, %cst_50 {dimension_numbers = #tpu.dot_dimension_numbers<[1], [0], [0], [1], [0, 0, 1, 1], [], []>} : vector<8x72xf32>, vector<72x512xf32>, vector<8x512xf32> -> vector<8x512xf32>
    %c0_51 = arith.constant 0 : index
    %c0_52 = arith.constant 0 : index
    %95 = vector.load %arg6[%c0_51, %c0_52] : memref<8x1xf32, #tpu.memory_space<vmem>>, vector<8x1xf32>
    %96 = vector.broadcast %95 : vector<8x1xf32> to vector<8x512xf32>
    %97 = arith.addf %94, %96 : vector<8x512xf32>
    %98 = arith.addf %97, %0 : vector<8x512xf32>
    %cst_53 = arith.constant 0.000000e+00 : f32
    %99 = vector.broadcast %cst_53 : f32 to vector<8x512xf32>
    %100 = arith.maximumf %98, %99 : vector<8x512xf32>
    %101 = vector.extract_strided_slice %100 {offsets = [0, 0], sizes = [4, 512], strides = [1, 1]} : vector<8x512xf32> to vector<4x512xf32>
    %c0_54 = arith.constant 0 : index
    %c0_55 = arith.constant 0 : index
    %102 = vector.load %arg7[%c0_54, %c0_55] : memref<4x512xf32, #tpu.memory_space<vmem>>, vector<4x512xf32>
    tpu.vector_store %arg7[%c0_54, %c0_55], %101 {strides = array<i32>} : memref<4x512xf32, #tpu.memory_space<vmem>>, vector<4x512xf32>,
    return
  }
  func.func @transform_0(%arg0: i32) -> (i32, i32) {
    %c0_i32 = arith.constant 0 : i32
    %c0_i32_0 = arith.constant 0 : i32
    %c0_i32_1 = arith.constant 0 : i32
    return %c0_i32, %c0_i32_0 : i32, i32
  }
  func.func @transform_1(%arg0: i32) -> (i32, i32) {
    %c0_i32 = arith.constant 0 : i32
    %c0_i32_0 = arith.constant 0 : i32
    return %c0_i32, %arg0 : i32, i32
  }
  func.func @transform_2(%arg0: i32) -> (i32, i32) {
    %c0_i32 = arith.constant 0 : i32
    %c0_i32_0 = arith.constant 0 : i32
    %c0_i32_1 = arith.constant 0 : i32
    return %c0_i32, %c0_i32_0 : i32, i32
  }
  func.func @transform_3(%arg0: i32) -> (i32, i32) {
    %c0_i32 = arith.constant 0 : i32
    %c0_i32_0 = arith.constant 0 : i32
    %c0_i32_1 = arith.constant 0 : i32
    return %c0_i32, %c0_i32_0 : i32, i32
  }
  func.func @transform_4(%arg0: i32) -> (i32, i32) {
    %c0_i32 = arith.constant 0 : i32
    %c0_i32_0 = arith.constant 0 : i32
    %c0_i32_1 = arith.constant 0 : i32
    return %c0_i32, %c0_i32_0 : i32, i32
  }
  func.func @transform_5(%arg0: i32) -> (i32, i32) {
    %c0_i32 = arith.constant 0 : i32
    %c0_i32_0 = arith.constant 0 : i32
    %c0_i32_1 = arith.constant 0 : i32
    return %c0_i32, %c0_i32_0 : i32, i32
  }
  func.func @transform_6(%arg0: i32) -> (i32, i32) {
    %c0_i32 = arith.constant 0 : i32
    %c0_i32_0 = arith.constant 0 : i32
    return %c0_i32, %arg0 : i32, i32
  }
}

</mosaic_0001>

<bundles_post_ra>
// kernel: tpu_custom_call.1
= control target key start
LH: loop header
LB: loop body
LE: loop exit
PB: predicated region body
PF: predicated region fallthrough
CT: control target
= control target key end

     0   :  { %11 = vsyncpa [#allocation4], 0  ;;  %s1410_s0 = inlined_call_operand.hbm [shape: f32[9,512], index: 0, kind: input, shape index: {}]   ;;  %s1411_s1 = inlined_call_operand.hbm [shape: f32[8,512], index: 1, kind: input, shape index: {}]   ;;  %s1412_s2 = inlined_call_operand.vmem [shape: f32[8,72], index: 2, kind: input, shape index: {}]   ;;  %s1413_s3 = inlined_call_operand.vmem [shape: f32[8,1], index: 3, kind: input, shape index: {}]   ;;  %s1414_s4 = inlined_call_operand.vmem [shape: f32[8,72], index: 4, kind: input, shape index: {}]   ;;  %s1415_s5 = inlined_call_operand.vmem [shape: f32[8,1], index: 5, kind: input, shape index: {}]   ;;  %s1416_s6 = inlined_call_operand.hbm [shape: f32[4,512], index: 6, kind: output, shape index: {}]  }
   0x1   :  { %12 = vsyncpa [#allocation7], 0 }
   0x2   :  { %13 = vsyncpa [#allocation5], 0  ;;  %s18_s23 = sshll.u32 %s1410_s0, 4  ;;  %s838_s24 = smov [#allocation3]   ;;  %s19_s23 = int_to_ptr.hbm [resolvable:$true] %s18_s23 }
   0x3   :  { %s20_s25 = sshll.u32 %s838_s24, 4  ;;  %s32_s28 = sshll.u32 %s1411_s1, 4  ;;  %s21_s25 = int_to_ptr.vmem [resolvable:$true] %s20_s25  ;;  %s33_s28 = int_to_ptr.hbm [resolvable:$true] %s32_s28 }
   0x4   :  { %s839_s29 = smov 512   ;;  %s840_s30 = smov 32  }
   0x5   :  { %26 = dma.hbm_to_vmem [thread:$0]  %s19_s23, 1024, %s21_s25, [#allocation4], %s839_s29, %s839_s29, %s840_s30  }
   0x6   :  { %s841_s7 = smov [#allocation6]  }
   0x7   :  { %s34_s8 = sshll.u32 %s841_s7, 4  ;;  %s35_s8 = int_to_ptr.vmem [resolvable:$true] %s34_s8 }
   0x8   :  { %37 = dma.hbm_to_vmem [thread:$0]  %s33_s28, 512, %s35_s8, [#allocation7]  }
   0x9   :  { %832 = dma.done.wait [#allocation4], 1024  }
   0xa   :  { %833 = vsyncadd [#allocation4], 4294966272 }
   0xb   :  { %834 = dma.done.wait [#allocation7], 512  }
   0xc   :  { %835 = vsyncadd [#allocation7], 4294966784  ;;  %v893_v0 = vld [vmem:[#allocation6 + $0x10] sm:$0xff]  ;;  %v895_v1 = vld [vmem:[#allocation6] sm:$0xff]  ;;  %s842_s0 = smov 111   ;;  %s843_s1 = smov 112   ;;  %v74_v6 = vlaneseq }
   0xd   :  { %251 = vrot.lane.b32.xlu2 %v893_v0, %s842_s0  ;;  %222 = vrot.lane.b32.xlu1 %v895_v1, %s843_s1  ;;  %v903_v2 = vld [vmem:[#allocation6 + $0x18] sm:$0xff]  ;;  %s844_s9 = smov 113   ;;  %s845_s10 = smov 127   ;;  %v917_v3 = vld [vmem:[#allocation6 + $0x8] sm:$0xff]  ;;  %v974_v10 = vld [vmem:[#allocation3 + $0x20] ss:$0 sm:$0xff] }
   0xe   :  { %247 = vrot.lane.b32.xlu0 %v895_v1, %s842_s0  ;;  %s846_s11 = smov 1   ;;  %s847_s12 = smov 15   ;;  %v969_v8 = vand.u32 127, %v74_v6  ;;  %v971_v9 = vld [vmem:[#allocation3 + $0x28] ss:$0 sm:$0xff]  ;;  %v982_v18 = vld [vmem:[#allocation3 + $0x18] sm:$0xff] }
   0xf   :  { %s848_s13 = smov 16   ;;  %s849_s14 = smov 17   ;;  %v985_v19 = vld [vmem:[#allocation3 + $0x30] ss:$0 sm:$0xff]  ;;  %v987_v20 = vld [vmem:[#allocation3 + $0x38] ss:$0 sm:$0xff] }
  0x10   :  { %vm255_vm0 = vcmp.lt.s32.totalorder %v969_v8, 111  ;;  %vm230_vm1 = vcmp.lt.s32.totalorder %v969_v8, 112  ;;  %v238_v23 = vperm.slane %v982_v18, 7  ;;  %v998_v29 = vld [vmem:[#allocation3 + $0x10] sm:$0xff]  ;;  %vm205_vm2 = vcmp.lt.s32.totalorder %v969_v8, 113  ;;  %v1028_v49 = vld [vmem:[#allocation3 + $0x8] sm:$0xff] }
  0x11   :  { %v237_v31 = vperm.slane %v998_v29, 7  ;;  %v213_v32 = vperm.slane %v982_v18, 6  ;;  %v212_v40 = vperm.slane %v998_v29, 6  ;;  %vm180_vm3 = vcmp.lt.s32.totalorder %v969_v8, 127  ;;  %v1030_v50 = vld [vmem:[#allocation3] sm:$0xff]  ;;  %s721_s23 = sshll.u32 %s1416_s6, 4  ;;  %s722_s23 = int_to_ptr.hbm [resolvable:$true] %s721_s23 }
  0x12   :  { %v188_v41 = vperm.slane %v982_v18, 5  ;;  %v235_v51 = vperm.slane %v1030_v50, 7  ;;  %v236_v52 = vperm.slane %v1028_v49, 7  ;;  %v187_v53 = vperm.slane %v998_v29, 5 }
  0x13   :  { %v210_v63 = vperm.slane %v1030_v50, 6  ;;  %vm151_vm4 = vcmp.lt.s32.totalorder %v969_v8, 1  ;;  %v159_v6 = vperm.slane %v982_v18, 3  ;;  %vm126_vm5 = vcmp.lt.s32.totalorder %v969_v8, 15 }
  0x14   :  { %vm101_vm6 = vcmp.lt.s32.totalorder %v969_v8, 16  ;;  %vm76_vm7 = vcmp.lt.s32.totalorder %v969_v8, 17  ;;  %vm315_vm8 = vcmask 588800   ;;  %vm707_vm9 = vcmask 1043456  }
  0x15   :  { %197 = vrot.lane.b32.xlu2 %v895_v1, %s844_s9  ;;  %228 = vrot.lane.b32.xlu1 %v903_v2, %s843_s1 }
  0x16   :  { %253 = vrot.lane.b32.xlu0 %v903_v2, %s842_s0 }
  0x1d   :  { %172 = vrot.lane.b32.xlu2 %v895_v1, %s845_s10  ;;  %226 = vrot.lane.b32.xlu1 %v893_v0, %s843_s1 }
  0x1e   :  { %203 = vrot.lane.b32.xlu0 %v903_v2, %s844_s9 }
  0x25   :  { %249 = vrot.lane.b32.xlu2 %v917_v3, %s842_s0  ;;  %201 = vrot.lane.b32.xlu1 %v893_v0, %s844_s9 }
  0x26   :  { %178 = vrot.lane.b32.xlu0 %v903_v2, %s845_s10 }
  0x2d   :  { %147 = vrot.lane.b32.xlu2 %v893_v0, %s846_s11  ;;  %224 = vrot.lane.b32.xlu1 %v917_v3, %s843_s1 }
  0x2e   :  { %176 = vrot.lane.b32.xlu0 %v893_v0, %s845_s10 }
  0x35   :  { %122 = vrot.lane.b32.xlu2 %v893_v0, %s847_s12  ;;  %199 = vrot.lane.b32.xlu1 %v917_v3, %s844_s9 }
  0x36   :  { %149 = vrot.lane.b32.xlu0 %v903_v2, %s846_s11 }
  0x3d   :  { %174 = vrot.lane.b32.xlu2 %v917_v3, %s845_s10  ;;  %145 = vrot.lane.b32.xlu1 %v917_v3, %s846_s11 }
  0x3e   :  { %124 = vrot.lane.b32.xlu0 %v903_v2, %s847_s12 }
  0x45   :  { %120 = vrot.lane.b32.xlu2 %v917_v3, %s847_s12  ;;  %99 = vrot.lane.b32.xlu1 %v903_v2, %s848_s13 }
  0x46   :  { %97 = vrot.lane.b32.xlu0 %v893_v0, %s848_s13 }
  0x4d   :  { %95 = vrot.lane.b32.xlu2 %v917_v3, %s848_s13  ;;  %72 = vrot.lane.b32.xlu1 %v903_v2, %s849_s14 }
  0x4e   :  { %70 = vrot.lane.b32.xlu0 %v893_v0, %s849_s14 }
  0x55   :  { %118 = vrot.lane.b32.xlu2 %v895_v1, %s847_s12  ;;  %68 = vrot.lane.b32.xlu1 %v917_v3, %s849_s14 }
  0x56   :  { %143 = vrot.lane.b32.xlu0 %v895_v1, %s846_s11 }
  0x5d   :  { %66 = vrot.lane.b32.xlu1 %v895_v1, %s849_s14 }
  0x5e   :  { %93 = vrot.lane.b32.xlu0 %v895_v1, %s848_s13 }
  0x67   :  { %v252_v4 = vpop.permute.xlu2 %251 }
  0x6f   :  { %v965_v5 = vpop.permute.xlu2 %197 }
  0x77   :  { %v967_v7 = vpop.permute.xlu2 %172 }
  0x7f   :  { %v250_v11 = vpop.permute.xlu2 %249  ;;  %v223_v12 = vpop.permute.xlu1 %222 }
  0x80   :  { %v248_v13 = vpop.permute.xlu0 %247  ;;  %v257_v14 = vsel %vm255_vm0, %v250_v11, %v252_v4 }
  0x81   :  { %v258_v15 = vsel %vm255_vm0, %v248_v13, %v250_v11  ;;  %v265_v16 = vmul.f32 %v971_v9, %v257_v14 }
  0x82   :  { %v264_v17 = vmul.f32 %v974_v10, %v258_v15 }
  0x83   :  { %346 = vmatpush.msra.mxu1 %v265_v16 }
  0x84   :  { %326 = vmatpush.msra.mxu0 %v264_v17 }
  0x87   :  { %v229_v21 = vpop.permute.xlu1 %228  ;;  %v1005_v34 = vpop.permute.xlu2 %147 }
  0x88   :  { %v254_v22 = vpop.permute.xlu0 %253  ;;  %v234_v24 = vsel %vm230_vm1, %v229_v21, %v223_v12 }
  0x89   :  { %v256_v25 = vsel %vm255_vm0, %v252_v4, %v254_v22  ;;  %v259_v26 = vsel %vm255_vm0, %v254_v22, %v248_v13  ;;  %v242_v30 = vmul.f32 %v238_v23, %v234_v24  ;;  %v211_v4 = vperm.slane %v1028_v49, 6 }
  0x8a   :  { %v266_v27 = vmul.f32 %v985_v19, %v256_v25  ;;  %v267_v28 = vmul.f32 %v987_v20, %v259_v26  ;;  %v186_v13 = vperm.slane %v1028_v49, 5 }
  0x8c   :  { %366 = vmatpush.msra.mxu2 %v266_v27  ;;  %386 = vmatpush.msra.mxu3 %v267_v28  ;;  %v158_v27 = vperm.slane %v998_v29, 3 }
  0x8e   :  { %387 = vmatpush.msra.mxu3 %v242_v30  ;;  %v134_v30 = vperm.slane %v982_v18, 2 }
  0x8f   :  { %v227_v33 = vpop.permute.xlu1 %226  ;;  %v123_v47 = vpop.permute.xlu2 %122 }
  0x90   :  { %v231_v35 = vsel %vm230_vm1, %v227_v33, %v229_v21  ;;  %v204_v36 = vpop.permute.xlu0 %203 }
  0x91   :  { %v209_v37 = vsel %vm205_vm2, %v204_v36, %v965_v5  ;;  %v241_v38 = vmul.f32 %v237_v31, %v231_v35  ;;  %v133_v35 = vperm.slane %v998_v29, 2 }
  0x92   :  { %v217_v39 = vmul.f32 %v213_v32, %v209_v37 }
  0x93   :  { %367 = vmatpush.msra.mxu2 %v241_v38 }
  0x94   :  { %388 = vmatpush.msra.mxu3 %v217_v39 }
  0x97   :  { %v202_v42 = vpop.permute.xlu1 %201  ;;  %v175_v62 = vpop.permute.xlu2 %174 }
  0x98   :  { %v206_v43 = vsel %vm205_vm2, %v202_v42, %v204_v36  ;;  %v179_v44 = vpop.permute.xlu0 %178  ;;  %v183_v14 = vsel %vm180_vm3, %v967_v7, %v175_v62 }
  0x99   :  { %v184_v45 = vsel %vm180_vm3, %v179_v44, %v967_v7  ;;  %v216_v46 = vmul.f32 %v212_v40, %v206_v43 }
  0x9a   :  { %v192_v48 = vmul.f32 %v188_v41, %v184_v45  ;;  %v109_v45 = vperm.slane %v982_v18, 1 }
  0x9b   :  { %368 = vmatpush.msra.mxu2 %v216_v46 }
  0x9c   :  { %389 = vmatpush.msra.mxu3 %v192_v48 }
  0x9e   :  { %390 = vmatpush.msra.mxu3 %v903_v2 }
  0x9f   :  { %v225_v54 = vpop.permute.xlu1 %224  ;;  %v121_v28 = vpop.permute.xlu2 %120 }
  0xa0   :  { %v232_v55 = vsel %vm230_vm1, %v225_v54, %v227_v33  ;;  %v233_v56 = vsel %vm230_vm1, %v223_v12, %v225_v54  ;;  %v177_v57 = vpop.permute.xlu0 %176  ;;  %v185_v12 = vperm.slane %v1030_v50, 5  ;;  %v128_v36 = vsel %vm126_vm5, %v121_v28, %v123_v47 }
  0xa1   :  { %v181_v58 = vsel %vm180_vm3, %v177_v57, %v179_v44  ;;  %v239_v59 = vmul.f32 %v235_v51, %v233_v56  ;;  %v240_v60 = vmul.f32 %v236_v52, %v232_v55  ;;  %v182_v15 = vsel %vm180_vm3, %v175_v62, %v177_v57 }
  0xa2   :  { %v191_v61 = vmul.f32 %v187_v53, %v181_v58  ;;  %v190_v26 = vmul.f32 %v186_v13, %v182_v15  ;;  %v137_v44 = vmul.f32 %v133_v35, %v128_v36  ;;  %v850_v55 = vmov 0   ;;  %v272_v15 = vld [vmem:[%s1412_s2] sm:$0xff] }
  0xa3   :  { %327 = vmatpush.msra.mxu0 %v239_v59  ;;  %347 = vmatpush.msra.mxu1 %v240_v60  ;;  %v84_v60 = vperm.slane %v982_v18, 0  ;;  %v131_v36 = vperm.slane %v1030_v50, 2 }
  0xa4   :  { %369 = vmatpush.msra.mxu2 %v191_v61  ;;  %754 = vset.pattern.permute.xlu2 %v850_v55 }
  0xa5   :  { %755 = vset.pattern.permute.xlu0 %v850_v55 }
  0xa6   :  { %370 = vmatpush.msra.mxu2 %v893_v0 }
  0xa7   :  { %v200_v11 = vpop.permute.xlu1 %199  ;;  %v96_v48 = vpop.permute.xlu2 %95 }
  0xa8   :  { %v207_v16 = vsel %vm205_vm2, %v200_v11, %v202_v42  ;;  %v208_v17 = vsel %vm205_vm2, %v965_v5, %v200_v11  ;;  %v1065_v21 = vpop.permute.xlu0 %149  ;;  %v189_v5 = vmul.f32 %v185_v12, %v183_v14 }
  0xa9   :  { %v152_v22 = vsel %vm151_vm4, %v1005_v34, %v1065_v21  ;;  %v214_v7 = vmul.f32 %v210_v63, %v208_v17  ;;  %v215_v24 = vmul.f32 %v211_v4, %v207_v16  ;;  %v83_v16 = vperm.slane %v998_v29, 0 }
  0xaa   :  { %v163_v25 = vmul.f32 %v159_v6, %v152_v22  ;;  %v156_v22 = vperm.slane %v1030_v50, 3 }
  0xab   :  { %328 = vmatpush.msra.mxu0 %v214_v7  ;;  %348 = vmatpush.msra.mxu1 %v215_v24  ;;  %v157_v7 = vperm.slane %v1028_v49, 3 }
  0xac   :  { %391 = vmatpush.msra.mxu3 %v163_v25 }
  0xad   :  { %329 = vmatpush.msra.mxu0 %v189_v5  ;;  %349 = vmatpush.msra.mxu1 %v190_v26 }
  0xaf   :  { %v146_v33 = vpop.permute.xlu1 %145  ;;  %330 = vmatpush.msra.mxu0 %v895_v1  ;;  %350 = vmatpush.msra.mxu1 %v917_v3  ;;  %v119_v17 = vpop.permute.xlu2 %118 }
  0xb0   :  { %v153_v37 = vsel %vm151_vm4, %v146_v33, %v1005_v34  ;;  %v125_v38 = vpop.permute.xlu0 %124  ;;  %v108_v34 = vperm.slane %v998_v29, 1  ;;  %v129_v25 = vsel %vm126_vm5, %v119_v17, %v121_v28 }
  0xb1   :  { %v127_v39 = vsel %vm126_vm5, %v123_v47, %v125_v38  ;;  %v162_v42 = vmul.f32 %v158_v27, %v153_v37  ;;  %v309_v47 = vld [vmem:[%s1413_s3] sm:$0xff]  ;;  %v132_v37 = vperm.slane %v1028_v49, 2 }
  0xb2   :  { %v138_v43 = vmul.f32 %v134_v30, %v127_v39  ;;  %312 = vperm.xlu2 %754, %v309_v47   ;;  %v130_v39 = vsel %vm126_vm5, %v125_v38, %v119_v17 }
  0xb3   :  { %371 = vmatpush.msra.mxu2 %v162_v42  ;;  %v135_v38 = vmul.f32 %v131_v36, %v130_v39 }
  0xb4   :  { %392 = vmatpush.msra.mxu3 %v138_v43 }
  0xb5   :  { %372 = vmatpush.msra.mxu2 %v137_v44 }
  0xb7   :  { %v100_v46 = vpop.permute.xlu1 %99 }
  0xb8   :  { %v98_v54 = vpop.permute.xlu0 %97 }
  0xb9   :  { %v102_v56 = vsel %vm101_vm6, %v98_v54, %v100_v46  ;;  %v103_v57 = vsel %vm101_vm6, %v96_v48, %v98_v54  ;;  %v107_v54 = vperm.slane %v1028_v49, 1 }
  0xba   :  { %v112_v58 = vmul.f32 %v108_v34, %v103_v57  ;;  %v113_v59 = vmul.f32 %v109_v45, %v102_v56  ;;  %v81_v57 = vperm.slane %v1030_v50, 0 }
  0xbc   :  { %373 = vmatpush.msra.mxu2 %v112_v58  ;;  %393 = vmatpush.msra.mxu3 %v113_v59  ;;  %v1417_v58 = vperm.slane %v1028_v49, 0 }
  0xbf   :  { %v73_v61 = vpop.permute.xlu1 %72 }
  0xc0   :  { %v71_v62 = vpop.permute.xlu0 %70 }
  0xc1   :  { %v77_v11 = vsel %vm76_vm7, %v71_v62, %v73_v61 }
  0xc2   :  { %v88_v14 = vmul.f32 %v84_v60, %v77_v11 }
  0xc4   :  { %394 = vmatpush.msra.mxu3 %v88_v14 }
  0xc5   :  { %735 = vmatmul.msk.f32.vlgmr.msra.gmra.mxu3 %vm315_vm8, %v272_v15 }
  0xc7   :  { %v69_v24 = vpop.permute.xlu1 %68 }
  0xc8   :  { %v78_v5 = vsel %vm76_vm7, %v69_v24, %v71_v62  ;;  %v144_v26 = vpop.permute.xlu0 %143 }
  0xc9   :  { %v154_v42 = vsel %vm151_vm4, %v144_v26, %v146_v33  ;;  %v155_v43 = vsel %vm151_vm4, %v1065_v21, %v144_v26  ;;  %v87_v28 = vmul.f32 %v83_v16, %v78_v5  ;;  %v136_v33 = vmul.f32 %v132_v37, %v129_v25 }
  0xca   :  { %v160_v44 = vmul.f32 %v156_v22, %v155_v43  ;;  %v161_v47 = vmul.f32 %v157_v7, %v154_v42  ;;  %v106_v21 = vperm.slane %v1030_v50, 1 }
  0xcb   :  { %374 = vmatpush.msra.mxu2 %v87_v28 }
  0xcc   :  { %331 = vmatpush.msra.mxu0 %v160_v44  ;;  %351 = vmatpush.msra.mxu1 %v161_v47 }
  0xcd   :  { %734 = vmatmul.msk.f32.vlgmr.msra.gmra.mxu2 %vm315_vm8, %v272_v15 }
  0xce   :  { %332 = vmatpush.msra.mxu0 %v135_v38  ;;  %352 = vmatpush.msra.mxu1 %v136_v33 }
  0xcf   :  { %v67_v55 = vpop.permute.xlu1 %66 }
  0xd0   :  { %v94_v56 = vpop.permute.xlu0 %93  ;;  %v79_v59 = vsel %vm76_vm7, %v67_v55, %v69_v24  ;;  %v80_v62 = vsel %vm76_vm7, %v73_v61, %v67_v55  ;;  %v604_v55 = vld [vmem:[%s1415_s5] sm:$0xff] }
  0xd1   :  { %v104_v11 = vsel %vm101_vm6, %v94_v56, %v96_v48  ;;  %v105_v14 = vsel %vm101_vm6, %v100_v46, %v94_v56  ;;  %v85_v24 = vmul.f32 %v81_v57, %v80_v62  ;;  %v86_v61 = vmul.f32 %v1417_v58, %v79_v59 }
  0xd2   :  { %v110_v17 = vmul.f32 %v106_v21, %v105_v14  ;;  %v111_v25 = vmul.f32 %v107_v54, %v104_v11 }
  0xd4   :  { %333 = vmatpush.msra.mxu0 %v110_v17  ;;  %353 = vmatpush.msra.mxu1 %v111_v25 }
  0xd6   :  { %334 = vmatpush.msra.mxu0 %v85_v24  ;;  %354 = vmatpush.msra.mxu1 %v86_v61 }
  0xd7   :  { %732 = vmatmul.msk.f32.vlgmr.msra.gmra.mxu0 %vm315_vm8, %v272_v15  ;;  %733 = vmatmul.msk.f32.vlgmr.msra.gmra.mxu1 %vm315_vm8, %v272_v15 }
 0x10c   :  { %v313_v46 = vpop.permute.xlu2 %312 }
 0x148   :  { %v396_v28 = vpop.f32.mrf.mxu3 }
 0x149   :  { %v397_v15 = vadd.f32 %v396_v28, %v313_v46 }
 0x14b   :  { %v1189_v44 = vmax.f32 %v397_v15, 0.0 }
 0x150   :  { %v376_v47 = vpop.f32.mrf.mxu2 }
 0x151   :  { %v377_v38 = vadd.f32 %v376_v47, %v313_v46 }
 0x153   :  { %v1209_v33 = vmax.f32 %v377_v38, 0.0 }
 0x154   :  { %v336_v48 = vpop.f32.mrf.mxu0  ;;  %v356_v5 = vpop.f32.mrf.mxu1 }
 0x155   :  { %v337_v26 = vadd.f32 %v336_v48, %v313_v46  ;;  %v357_v39 = vadd.f32 %v356_v5, %v313_v46 }
 0x157   :  { %v1173_v42 = vmax.f32 %v337_v26, 0.0  ;;  %v1175_v43 = vmax.f32 %v357_v39, 0.0 }
 0x159   :  { %527 = vrot.lane.b32.xlu2 %v1173_v42, %s843_s1  ;;  %547 = vrot.lane.b32.xlu0 %v1173_v42, %s842_s0 }
 0x15a   :  { %529 = vrot.lane.b32.xlu1 %v1175_v43, %s843_s1 }
 0x161   :  { %507 = vrot.lane.b32.xlu2 %v1173_v42, %s844_s9  ;;  %463 = vrot.lane.b32.xlu0 %v1173_v42, %s846_s11 }
 0x162   :  { %509 = vrot.lane.b32.xlu1 %v1175_v43, %s844_s9 }
 0x169   :  { %487 = vrot.lane.b32.xlu2 %v1173_v42, %s845_s10  ;;  %533 = vrot.lane.b32.xlu0 %v1189_v44, %s843_s1 }
 0x16a   :  { %465 = vrot.lane.b32.xlu1 %v1175_v43, %s846_s11 }
 0x171   :  { %513 = vrot.lane.b32.xlu0 %v1189_v44, %s844_s9  ;;  %549 = vrot.lane.b32.xlu2 %v1175_v43, %s842_s0 }
 0x172   :  { %405 = vrot.lane.b32.xlu1 %v1175_v43, %s849_s14 }
 0x179   :  { %493 = vrot.lane.b32.xlu0 %v1189_v44, %s845_s10  ;;  %489 = vrot.lane.b32.xlu2 %v1175_v43, %s845_s10 }
 0x17a   :  { %553 = vrot.lane.b32.xlu1 %v1189_v44, %s842_s0 }
 0x181   :  { %491 = vrot.lane.b32.xlu0 %v1209_v33, %s845_s10  ;;  %445 = vrot.lane.b32.xlu2 %v1175_v43, %s847_s12 }
 0x182   :  { %551 = vrot.lane.b32.xlu1 %v1209_v33, %s842_s0 }
 0x189   :  { %469 = vrot.lane.b32.xlu0 %v1189_v44, %s846_s11  ;;  %425 = vrot.lane.b32.xlu2 %v1175_v43, %s848_s13 }
 0x18a   :  { %531 = vrot.lane.b32.xlu1 %v1209_v33, %s843_s1 }
 0x191   :  { %449 = vrot.lane.b32.xlu0 %v1189_v44, %s847_s12  ;;  %467 = vrot.lane.b32.xlu2 %v1209_v33, %s846_s11 }
 0x192   :  { %511 = vrot.lane.b32.xlu1 %v1209_v33, %s844_s9 }
 0x199   :  { %427 = vrot.lane.b32.xlu0 %v1209_v33, %s848_s13  ;;  %447 = vrot.lane.b32.xlu2 %v1209_v33, %s847_s12 }
 0x19a   :  { %429 = vrot.lane.b32.xlu1 %v1189_v44, %s848_s13 }
 0x1a1   :  { %407 = vrot.lane.b32.xlu0 %v1209_v33, %s849_s14  ;;  %443 = vrot.lane.b32.xlu2 %v1173_v42, %s847_s12 }
 0x1a2   :  { %409 = vrot.lane.b32.xlu1 %v1189_v44, %s849_s14 }
 0x1a9   :  { %423 = vrot.lane.b32.xlu0 %v1173_v42, %s848_s13  ;;  %607 = vperm.xlu2 %754, %v604_v55  }
 0x1aa   :  { %403 = vrot.lane.b32.xlu1 %v1173_v42, %s849_s14 }
 0x1b3   :  { %v528_v56 = vpop.permute.xlu2 %527 }
 0x1bb   :  { %v508_v59 = vpop.permute.xlu2 %507 }
 0x1c3   :  { %v488_v62 = vpop.permute.xlu2 %487 }
 0x1cb   :  { %v548_v11 = vpop.permute.xlu0 %547  ;;  %v550_v14 = vpop.permute.xlu2 %549 }
 0x1cc   :  { %v530_v17 = vpop.permute.xlu1 %529  ;;  %v557_v25 = vsel %vm255_vm0, %v548_v11, %v550_v14 }
 0x1cd   :  { %v537_v24 = vsel %vm230_vm1, %v528_v56, %v530_v17  ;;  %v559_v61 = vmul.f32 %v974_v10, %v557_v25 }
 0x1ce   :  { %v539_v46 = vmul.f32 %v537_v24, %v235_v51 }
 0x1cf   :  { %620 = vmatpush.msrb.mxu0 %v559_v61 }
 0x1d1   :  { %621 = vmatpush.msrb.mxu0 %v539_v46 }
 0x1d3   :  { %v1255_v48 = vpop.permute.xlu0 %463  ;;  %v490_v5 = vpop.permute.xlu2 %489 }
 0x1d4   :  { %v510_v26 = vpop.permute.xlu1 %509  ;;  %v497_v28 = vsel %vm180_vm3, %v488_v62, %v490_v5 }
 0x1d5   :  { %v517_v39 = vsel %vm205_vm2, %v508_v59, %v510_v26  ;;  %v499_v10 = vmul.f32 %v497_v28, %v185_v12 }
 0x1d6   :  { %v519_v15 = vmul.f32 %v517_v39, %v210_v63 }
 0x1d8   :  { %622 = vmatpush.msrb.mxu0 %v519_v15 }
 0x1da   :  { %623 = vmatpush.msrb.mxu0 %v499_v10 }
 0x1db   :  { %v534_v51 = vpop.permute.xlu0 %533  ;;  %v1265_v47 = vpop.permute.xlu2 %445 }
 0x1dc   :  { %v1267_v38 = vpop.permute.xlu1 %465  ;;  %624 = vmatpush.msrb.mxu0 %v1173_v42  ;;  %v538_v63 = vsel %vm230_vm1, %v534_v51, %v528_v56 }
 0x1dd   :  { %v542_v42 = vmul.f32 %v538_v63, %v238_v23 }
 0x1e3   :  { %v514_v55 = vpop.permute.xlu0 %513  ;;  %v1272_v24 = vpop.permute.xlu2 %425 }
 0x1e4   :  { %v1270_v25 = vpop.permute.xlu1 %405  ;;  %v518_v28 = vsel %vm205_vm2, %v514_v55, %v508_v59 }
 0x1e5   :  { %v522_v56 = vmul.f32 %v518_v28, %v213_v32 }
 0x1eb   :  { %v494_v61 = vpop.permute.xlu0 %493  ;;  %v468_v15 = vpop.permute.xlu2 %467 }
 0x1ec   :  { %v554_v46 = vpop.permute.xlu1 %553  ;;  %v498_v10 = vsel %vm180_vm3, %v494_v61, %v488_v62 }
 0x1ed   :  { %v558_v12 = vsel %vm255_vm0, %v554_v46, %v548_v11 }
 0x1ee   :  { %v562_v39 = vmul.f32 %v987_v20, %v558_v12  ;;  %v502_v20 = vmul.f32 %v498_v10, %v188_v41 }
 0x1f0   :  { %680 = vmatpush.msrb.mxu3 %v562_v39 }
 0x1f2   :  { %681 = vmatpush.msrb.mxu3 %v542_v42 }
 0x1f3   :  { %v492_v58 = vpop.permute.xlu0 %491  ;;  %v448_v32 = vpop.permute.xlu2 %447 }
 0x1f4   :  { %682 = vmatpush.msrb.mxu3 %v522_v56  ;;  %v552_v11 = vpop.permute.xlu1 %551 }
 0x1f5   :  { %v555_v59 = vsel %vm255_vm0, %v552_v11, %v554_v46  ;;  %v556_v12 = vsel %vm255_vm0, %v550_v14, %v552_v11 }
 0x1f6   :  { %683 = vmatpush.msrb.mxu3 %v502_v20  ;;  %v560_v23 = vmul.f32 %v971_v9, %v556_v12  ;;  %v561_v62 = vmul.f32 %v985_v19, %v555_v59 }
 0x1f8   :  { %640 = vmatpush.msrb.mxu1 %v560_v23  ;;  %660 = vmatpush.msrb.mxu2 %v561_v62 }
 0x1f9   :  { %684 = vmatpush.msrb.mxu3 %v1189_v44 }
 0x1fb   :  { %v470_v63 = vpop.permute.xlu0 %469 }
 0x1fc   :  { %v471_v41 = vsel %vm151_vm4, %v468_v15, %v470_v63  ;;  %v474_v46 = vsel %vm151_vm4, %v470_v63, %v1255_v48  ;;  %v532_v39 = vpop.permute.xlu1 %531 }
 0x1fd   :  { %v535_v14 = vsel %vm230_vm1, %v532_v39, %v534_v51  ;;  %v536_v9 = vsel %vm230_vm1, %v530_v17, %v532_v39  ;;  %v475_v19 = vmul.f32 %v474_v46, %v156_v22  ;;  %v478_v44 = vmul.f32 %v471_v41, %v159_v6  ;;  %v444_v51 = vpop.permute.xlu2 %443 }
 0x1fe   :  { %v540_v28 = vmul.f32 %v536_v9, %v236_v52  ;;  %v541_v42 = vmul.f32 %v535_v14, %v237_v31  ;;  %v495_v17 = vsel %vm180_vm3, %v492_v58, %v494_v61  ;;  %v496_v22 = vsel %vm180_vm3, %v490_v5, %v492_v58 }
 0x1ff   :  { %625 = vmatpush.msrb.mxu0 %v475_v19  ;;  %685 = vmatpush.msrb.mxu3 %v478_v44  ;;  %v1418_v46 = vperm.slane %v1028_v49, 0 }
 0x200   :  { %641 = vmatpush.msrb.mxu1 %v540_v28  ;;  %661 = vmatpush.msrb.mxu2 %v541_v42 }
 0x203   :  { %v450_v10 = vpop.permute.xlu0 %449 }
 0x204   :  { %v451_v6 = vsel %vm126_vm5, %v448_v32, %v450_v10  ;;  %v454_v52 = vsel %vm126_vm5, %v450_v10, %v444_v51  ;;  %v512_v56 = vpop.permute.xlu1 %511 }
 0x205   :  { %v515_v31 = vsel %vm205_vm2, %v512_v56, %v514_v55  ;;  %v516_v11 = vsel %vm205_vm2, %v510_v26, %v512_v56  ;;  %v455_v20 = vmul.f32 %v454_v52, %v131_v36  ;;  %v458_v61 = vmul.f32 %v451_v6, %v134_v30  ;;  %v608_v8 = vpop.permute.xlu2 %607 }
 0x206   :  { %v520_v58 = vmul.f32 %v516_v11, %v211_v4  ;;  %v521_v5 = vmul.f32 %v515_v31, %v212_v40  ;;  %v500_v55 = vmul.f32 %v496_v22, %v186_v13  ;;  %v501_v26 = vmul.f32 %v495_v17, %v187_v53 }
 0x207   :  { %626 = vmatpush.msrb.mxu0 %v455_v20  ;;  %686 = vmatpush.msrb.mxu3 %v458_v61  ;;  %v473_v30 = vsel %vm151_vm4, %v1255_v48, %v1267_v38  ;;  %v472_v4 = vsel %vm151_vm4, %v1267_v38, %v468_v15  ;;  %v452_v40 = vsel %vm126_vm5, %v1265_v47, %v448_v32 }
 0x208   :  { %642 = vmatpush.msrb.mxu1 %v520_v58  ;;  %662 = vmatpush.msrb.mxu2 %v521_v5  ;;  %v453_v13 = vsel %vm126_vm5, %v444_v51, %v1265_v47  ;;  %v476_v48 = vmul.f32 %v473_v30, %v157_v7  ;;  %v477_v38 = vmul.f32 %v472_v4, %v158_v27 }
 0x20a   :  { %643 = vmatpush.msrb.mxu1 %v500_v55  ;;  %663 = vmatpush.msrb.mxu2 %v501_v26 }
 0x20b   :  { %v428_v53 = vpop.permute.xlu0 %427 }
 0x20c   :  { %664 = vmatpush.msrb.mxu2 %v1209_v33  ;;  %v430_v36 = vpop.permute.xlu1 %429  ;;  %644 = vmatpush.msrb.mxu1 %v1175_v43  ;;  %v432_v15 = vsel %vm101_vm6, %v1272_v24, %v428_v53  ;;  %v456_v33 = vmul.f32 %v453_v13, %v132_v37  ;;  %v457_v43 = vmul.f32 %v452_v40, %v133_v35 }
 0x20d   :  { %v431_v59 = vsel %vm101_vm6, %v428_v53, %v430_v36  ;;  %v437_v27 = vmul.f32 %v432_v15, %v108_v34 }
 0x20e   :  { %645 = vmatpush.msrb.mxu1 %v476_v48  ;;  %665 = vmatpush.msrb.mxu2 %v477_v38  ;;  %v438_v7 = vmul.f32 %v431_v59, %v109_v45  ;;  %v567_v45 = vld [vmem:[%s1414_s4] sm:$0xff]  ;;  %s851_s4 = smov [#allocation8]  }
 0x20f   :  { %s719_s20 = sshll.u32 %s851_s4, 4  ;;  %s720_s20 = int_to_ptr.vmem [resolvable:$true] %s719_s20 }
 0x210   :  { %646 = vmatpush.msrb.mxu1 %v456_v33  ;;  %666 = vmatpush.msrb.mxu2 %v457_v43 }
 0x211   :  { %687 = vmatpush.msrb.mxu3 %v438_v7 }
 0x212   :  { %667 = vmatpush.msrb.mxu2 %v437_v27 }
 0x213   :  { %v408_v47 = vpop.permute.xlu0 %407 }
 0x214   :  { %v412_v12 = vsel %vm76_vm7, %v1270_v25, %v408_v47  ;;  %v410_v23 = vpop.permute.xlu1 %409 }
 0x215   :  { %v411_v37 = vsel %vm76_vm7, %v408_v47, %v410_v23  ;;  %v417_v35 = vmul.f32 %v412_v12, %v83_v16 }
 0x216   :  { %v418_v34 = vmul.f32 %v411_v37, %v84_v60 }
 0x217   :  { %668 = vmatpush.msrb.mxu2 %v417_v35 }
 0x218   :  { %688 = vmatpush.msrb.mxu3 %v418_v34  ;;  %738 = vmatmul.msk.f32.vlgmr.msrb.gmra.mxu2 %vm315_vm8, %v567_v45 }
 0x219   :  { %739 = vmatmul.msk.f32.vlgmr.msrb.gmra.mxu3 %vm315_vm8, %v567_v45 }
 0x21b   :  { %v424_v62 = vpop.permute.xlu0 %423 }
 0x21c   :  { %v433_v32 = vsel %vm101_vm6, %v424_v62, %v1272_v24  ;;  %v434_v29 = vsel %vm101_vm6, %v430_v36, %v424_v62  ;;  %v404_v16 = vpop.permute.xlu1 %403 }
 0x21d   :  { %v413_v18 = vsel %vm76_vm7, %v404_v16, %v1270_v25  ;;  %v414_v60 = vsel %vm76_vm7, %v410_v23, %v404_v16  ;;  %v435_v63 = vmul.f32 %v434_v29, %v106_v21  ;;  %v436_v41 = vmul.f32 %v433_v32, %v107_v54 }
 0x21e   :  { %v415_v24 = vmul.f32 %v414_v60, %v81_v57  ;;  %v416_v39 = vmul.f32 %v413_v18, %v1418_v46 }
 0x21f   :  { %627 = vmatpush.msrb.mxu0 %v435_v63  ;;  %647 = vmatpush.msrb.mxu1 %v436_v41 }
 0x221   :  { %628 = vmatpush.msrb.mxu0 %v415_v24  ;;  %648 = vmatpush.msrb.mxu1 %v416_v39 }
 0x222   :  { %736 = vmatmul.msk.f32.vlgmr.msrb.gmra.mxu0 %vm315_vm8, %v567_v45  ;;  %737 = vmatmul.msk.f32.vlgmr.msrb.gmra.mxu1 %vm315_vm8, %v567_v45 }
 0x29b   :  { %v670_v25 = vpop.f32.mrf.mxu2 }
 0x29c   :  { %v671_v21 = vadd.f32 %v670_v25, %v608_v8  ;;  %v690_v14 = vpop.f32.mrf.mxu3 }
 0x29d   :  { %v691_v9 = vadd.f32 %v690_v14, %v608_v8 }
 0x29e   :  { %v695_v54 = vadd.f32 %v671_v21, %v893_v0 }
 0x29f   :  { %v696_v19 = vadd.f32 %v691_v9, %v903_v2  ;;  %v630_v50 = vpop.f32.mrf.mxu0  ;;  %v650_v57 = vpop.f32.mrf.mxu1 }
 0x2a0   :  { %v631_v44 = vadd.f32 %v630_v50, %v608_v8  ;;  %v651_v49 = vadd.f32 %v650_v57, %v608_v8  ;;  %v699_v10 = vmax.f32 %v695_v54, 0.0 }
 0x2a1   :  { %v700_v28 = vmax.f32 %v696_v19, 0.0 }
 0x2a2   :  { %v693_v42 = vadd.f32 %v631_v44, %v895_v1  ;;  %v694_v51 = vadd.f32 %v651_v49, %v917_v3 }
 0x2a3   :  { %v706_v17 = vrot.slane %v700_v28, 4 }
 0x2a4   :  { %v698_v22 = vmax.f32 %v694_v51, 0.0  ;;  %v697_v2 = vmax.f32 %v693_v42, 0.0 }
 0x2a5   :  { %v709_v0 = vsel %vm707_vm9, %v699_v10, %v706_v17 }
 0x2a6   :  { %v705_v6 = vrot.slane %v698_v22, 4  ;;  %713 = vst [vmem:[#allocation8 + $0x8] sm:$0xff] %v709_v0 }
 0x2a8   :  { %v708_v52 = vsel %vm707_vm9, %v697_v2, %v705_v6 }
 0x2a9   :  { %712 = vst [vmem:[#allocation8] sm:$0xff] %v708_v52 }
 0x2aa   :  { %724 = dma.vmem_to_hbm [thread:$0]  %s720_s20, 256, %s722_s23, [#allocation5]  }
 0x2ab   :  { %836 = dma.done.wait [#allocation5], 256  }
 0x2ac   :  { %837 = vsyncadd [#allocation5], 4294967040 }
 0x2ad   :  { %729 = vsyncpa [#allocation4], 1 }
 0x2ae   :  { %730 = vsyncpa [#allocation7], 1 }
 0x2af   :  { %731 = vsyncpa [#allocation5], 1 }

</bundles_post_ra>
